<compile_context>
chip_gen: v7x
topology: tpu7x:2x2x1
jax: 0.10.0
libtpu: 0.0.40
codegen_flags: <defaults>
</compile_context>

<pallas_src>
import math

import jax
import jax.numpy as jnp
from jax.experimental import pallas as pl
from jax.experimental.pallas import tpu as pltpu


def _timestep_embedder_kernel(t_ref, freqs_ref, w1_ref, b1_ref, w2_ref, b2_ref, o_ref):
    # t_ref:     (TN, 1)      f32  timesteps for this row tile
    # freqs_ref: (1, half)    f32  precomputed frequencies
    # w1_ref:    (F, H)       f32  first Linear weight (in, out) layout
    # b1_ref:    (1, H)       f32
    # w2_ref:    (H, H)       f32
    # b2_ref:    (1, H)       f32
    # o_ref:     (TN, H)      f32
    half = freqs_ref.shape[-1]                     # static at trace time

    args = t_ref[...] * freqs_ref[...]             # (TN, half) broadcast
    cos_a = jnp.cos(args)
    sin_a = jnp.sin(args)

    # emb = concat([cos, sin], -1); emb @ W1 == cos @ W1[:half] + sin @ W1[half:]
    # -> avoids materializing the concatenated (TN, F) intermediate.
    h = (
        jnp.dot(cos_a, w1_ref[:half, :], preferred_element_type=jnp.float32)
        + jnp.dot(sin_a, w1_ref[half:, :], preferred_element_type=jnp.float32)
        + b1_ref[...]
    )
    h = h * jax.nn.sigmoid(h)                      # SiLU (sigmoid on EUP)

    o_ref[...] = (
        jnp.dot(h, w2_ref[...], preferred_element_type=jnp.float32) + b2_ref[...]
    ).astype(o_ref.dtype)


def _round_up(x: int, m: int) -> int:
    return ((x + m - 1) // m) * m


def timestep_embedder(
    time: jax.Array,
    w1: jax.Array,      # (frequency_embedding_size, hidden)
    b1: jax.Array,      # (hidden,)
    w2: jax.Array,      # (hidden, hidden)
    b2: jax.Array,      # (hidden,)
    *,
    max_period: int = 10000,
    block_rows: int = 256,
) -> jax.Array:
    """Pallas TimestepEmbedder forward. Returns (N, hidden) float32."""
    (N,) = time.shape
    F_, H = w1.shape
    assert w2.shape == (H, H) and b1.shape == (H,) and b2.shape == (H,)
    # TODO(synk): odd frequency_embedding_size (zero-pad last column) not handled;
    # the module default (256) and all practical configs are even.
    assert F_ % 2 == 0, "frequency_embedding_size must be even"
    half = F_ // 2

    # Precompute frequencies once on host (constant w.r.t. time).
    freqs = jnp.exp(
        -math.log(max_period) * jnp.arange(half, dtype=jnp.float32) / half
    ).reshape(1, half)

    # Row tiling: multiple of 8 sublanes, padded grid (never a single giant block).
    block_rows = max(8, _round_up(min(block_rows, max(N, 1)), 8))
    rows_pad = _round_up(max(N, 1), block_rows)
    grid = (rows_pad // block_rows,)

    t2d = time.astype(jnp.float32).reshape(N, 1)
    if rows_pad != N:
        t2d = jnp.pad(t2d, ((0, rows_pad - N), (0, 0)))

    b1_2d = b1.astype(jnp.float32).reshape(1, H)
    b2_2d = b2.astype(jnp.float32).reshape(1, H)
    w1_f = w1.astype(jnp.float32)
    w2_f = w2.astype(jnp.float32)

    # VMEM budget: 2x (double buffer) of all resident blocks + compute temporaries.
    f32b = 4
    fixed = (half + F_ * H + H * H + 2 * H) * f32b
    per_block = block_rows * (1 + H) * f32b
    temps = block_rows * (3 * half + 2 * H) * f32b
    vmem_limit = int(min(max(2 * (fixed + per_block) + temps + (4 << 20), 16 << 20), 64 << 20))

    cost = pl.CostEstimate(
        flops=2 * rows_pad * (F_ * H + H * H) + 6 * rows_pad * F_,
        transcendentals=rows_pad * (F_ + H),
        bytes_accessed=(rows_pad * (1 + H) + half + F_ * H + H * H + 2 * H) * f32b,
    )

    out_pad = pl.pallas_call(
        _timestep_embedder_kernel,
        out_shape=jax.ShapeDtypeStruct((rows_pad, H), jnp.float32),
        grid_spec=pl.GridSpec(
            grid=grid,
            in_specs=[
                pl.BlockSpec((block_rows, 1), lambda i: (i, 0)),   # time
                pl.BlockSpec((1, half), lambda i: (0, 0)),          # freqs
                pl.BlockSpec((F_, H), lambda i: (0, 0)),             # W1
                pl.BlockSpec((1, H), lambda i: (0, 0)),               # b1
                pl.BlockSpec((H, H), lambda i: (0, 0)),               # W2
                pl.BlockSpec((1, H), lambda i: (0, 0)),               # b2
            ],
            out_specs=pl.BlockSpec((block_rows, H), lambda i: (i, 0)),
        ),
        compiler_params=pltpu.CompilerParams(
            dimension_semantics=("parallel",),
            vmem_limit_bytes=vmem_limit,
        ),
        cost_estimate=cost,
    )(t2d, freqs, w1_f, b1_2d, w2_f, b2_2d)

    return out_pad[:N]


if __name__ == "__main__":
    # Small shapes consistent with the module: N timesteps, F=256 (default), H=128.
    N = 8
    FREQ_DIM = 256
    HIDDEN = 128

    key = jax.random.PRNGKey(0)
    k1, k2, k3, k4, k5 = jax.random.split(key, 5)
    time = jax.random.uniform(k1, (N,), dtype=jnp.float32) * 1000.0
    w1 = jax.random.normal(k2, (FREQ_DIM, HIDDEN), dtype=jnp.float32) * 0.02
    b1 = jax.random.normal(k3, (HIDDEN,), dtype=jnp.float32) * 0.02
    w2 = jax.random.normal(k4, (HIDDEN, HIDDEN), dtype=jnp.float32) * 0.02
    b2 = jax.random.normal(k5, (HIDDEN,), dtype=jnp.float32) * 0.02

    out = timestep_embedder(time, w1, b1, w2, b2)
    out = jax.block_until_ready(out)

    # Plain-JAX reference replicating the PyTorch forward.
    half = FREQ_DIM // 2
    freqs = jnp.exp(-math.log(10000.0) * jnp.arange(half, dtype=jnp.float32) / half)
    args = time[:, None].astype(jnp.float32) * freqs[None, :]
    emb = jnp.concatenate([jnp.cos(args), jnp.sin(args)], axis=-1)
    h = emb @ w1 + b1[None, :]
    h = h * jax.nn.sigmoid(h)
    ref = h @ w2 + b2[None, :]

    assert out.shape == (N, HIDDEN) and out.dtype == jnp.float32
    assert jnp.allclose(out, ref, atol=1e-3, rtol=1e-3), float(jnp.max(jnp.abs(out - ref)))

    print("KERNEL_OK")
</pallas_src>

<mosaic_0001>
module attributes {stable_mosaic.version = 11 : i64} {
  func.func @_timestep_embedder_kernel(%arg0: i32, %arg1: memref<8x1xf32, #tpu.memory_space<vmem>>, %arg2: memref<1x128xf32, #tpu.memory_space<vmem>>, %arg3: memref<256x128xf32, #tpu.memory_space<vmem>>, %arg4: memref<1x128xf32, #tpu.memory_space<vmem>>, %arg5: memref<128x128xf32, #tpu.memory_space<vmem>>, %arg6: memref<1x128xf32, #tpu.memory_space<vmem>>, %arg7: memref<8x128xf32, #tpu.memory_space<vmem>>) attributes {dimension_semantics = [#tpu.dimension_semantics<parallel>], iteration_bounds = array<i64: 1>, scalar_prefetch = 0 : i64, scratch_operands = 0 : i64, tpu.core_type = #tpu.core_type<tc>, window_params = [{transform_indices = @transform_0, window_bounds = array<i64: 8, 1>}, {pipeline_mode = #tpu.pipeline_mode<synchronous>, transform_indices = @transform_1, window_bounds = array<i64: 1, 128>}, {pipeline_mode = #tpu.pipeline_mode<synchronous>, transform_indices = @transform_2, window_bounds = array<i64: 256, 128>}, {pipeline_mode = #tpu.pipeline_mode<synchronous>, transform_indices = @transform_3, window_bounds = array<i64: 1, 128>}, {pipeline_mode = #tpu.pipeline_mode<synchronous>, transform_indices = @transform_4, window_bounds = array<i64: 128, 128>}, {pipeline_mode = #tpu.pipeline_mode<synchronous>, transform_indices = @transform_5, window_bounds = array<i64: 1, 128>}, {transform_indices = @transform_6, window_bounds = array<i64: 8, 128>}]} {
    %c0 = arith.constant 0 : index
    %c0_0 = arith.constant 0 : index
    %0 = vector.load %arg1[%c0, %c0_0] : memref<8x1xf32, #tpu.memory_space<vmem>>, vector<8x1xf32>
    %c0_1 = arith.constant 0 : index
    %c0_2 = arith.constant 0 : index
    %1 = vector.load %arg2[%c0_1, %c0_2] : memref<1x128xf32, #tpu.memory_space<vmem>>, vector<1x128xf32>
    %2 = vector.broadcast %0 : vector<8x1xf32> to vector<8x128xf32>
    %3 = vector.broadcast %1 : vector<1x128xf32> to vector<8x128xf32>
    %4 = arith.mulf %2, %3 : vector<8x128xf32>
    %5 = math.cos %4 : vector<8x128xf32>
    %6 = math.sin %4 : vector<8x128xf32>
    %c0_3 = arith.constant 0 : index
    %c0_4 = arith.constant 0 : index
    %7 = vector.load %arg3[%c0_3, %c0_4] : memref<256x128xf32, #tpu.memory_space<vmem>>, vector<128x128xf32>
    %cst = arith.constant dense<0.000000e+00> : vector<8x128xf32>
    %8 = tpu.matmul %5, %7, %cst {dimension_numbers = #tpu.dot_dimension_numbers<[1], [0], [0], [1], [0, 0, 1, 1], [], []>} : vector<8x128xf32>, vector<128x128xf32>, vector<8x128xf32> -> vector<8x128xf32>
    %c128 = arith.constant 128 : index
    %c0_5 = arith.constant 0 : index
    %9 = vector.load %arg3[%c128, %c0_5] : memref<256x128xf32, #tpu.memory_space<vmem>>, vector<128x128xf32>
    %cst_6 = arith.constant dense<0.000000e+00> : vector<8x128xf32>
    %10 = tpu.matmul %6, %9, %cst_6 {dimension_numbers = #tpu.dot_dimension_numbers<[1], [0], [0], [1], [0, 0, 1, 1], [], []>} : vector<8x128xf32>, vector<128x128xf32>, vector<8x128xf32> -> vector<8x128xf32>
    %11 = arith.addf %8, %10 : vector<8x128xf32>
    %c0_7 = arith.constant 0 : index
    %c0_8 = arith.constant 0 : index
    %12 = vector.load %arg4[%c0_7, %c0_8] : memref<1x128xf32, #tpu.memory_space<vmem>>, vector<1x128xf32>
    %13 = vector.broadcast %12 : vector<1x128xf32> to vector<8x128xf32>
    %14 = arith.addf %11, %13 : vector<8x128xf32>
    %15 = arith.negf %14 : vector<8x128xf32>
    %16 = math.exp %15 : vector<8x128xf32>
    %cst_9 = arith.constant 1.000000e+00 : f32
    %17 = vector.broadcast %cst_9 : f32 to vector<8x128xf32>
    %18 = arith.addf %17, %16 : vector<8x128xf32>
    %19 = arith.divf %17, %18 : vector<8x128xf32>
    %20 = arith.mulf %14, %19 : vector<8x128xf32>
    %c0_10 = arith.constant 0 : index
    %c0_11 = arith.constant 0 : index
    %21 = vector.load %arg5[%c0_10, %c0_11] : memref<128x128xf32, #tpu.memory_space<vmem>>, vector<128x128xf32>
    %cst_12 = arith.constant dense<0.000000e+00> : vector<8x128xf32>
    %22 = tpu.matmul %20, %21, %cst_12 {dimension_numbers = #tpu.dot_dimension_numbers<[1], [0], [0], [1], [0, 0, 1, 1], [], []>} : vector<8x128xf32>, vector<128x128xf32>, vector<8x128xf32> -> vector<8x128xf32>
    %c0_13 = arith.constant 0 : index
    %c0_14 = arith.constant 0 : index
    %23 = vector.load %arg6[%c0_13, %c0_14] : memref<1x128xf32, #tpu.memory_space<vmem>>, vector<1x128xf32>
    %24 = vector.broadcast %23 : vector<1x128xf32> to vector<8x128xf32>
    %25 = arith.addf %22, %24 : vector<8x128xf32>
    %c0_15 = arith.constant 0 : index
    %c0_16 = arith.constant 0 : index
    %26 = vector.load %arg7[%c0_15, %c0_16] : memref<8x128xf32, #tpu.memory_space<vmem>>, vector<8x128xf32>
    tpu.vector_store %arg7[%c0_15, %c0_16], %25 {strides = array<i32>} : memref<8x128xf32, #tpu.memory_space<vmem>>, vector<8x128xf32>,
    return
  }
  func.func @transform_0(%arg0: i32) -> (i32, i32) {
    %c0_i32 = arith.constant 0 : i32
    %c0_i32_0 = arith.constant 0 : i32
    return %arg0, %c0_i32 : i32, i32
  }
  func.func @transform_1(%arg0: i32) -> (i32, i32) {
    %c0_i32 = arith.constant 0 : i32
    %c0_i32_0 = arith.constant 0 : i32
    %c0_i32_1 = arith.constant 0 : i32
    return %c0_i32, %c0_i32_0 : i32, i32
  }
  func.func @transform_2(%arg0: i32) -> (i32, i32) {
    %c0_i32 = arith.constant 0 : i32
    %c0_i32_0 = arith.constant 0 : i32
    %c0_i32_1 = arith.constant 0 : i32
    return %c0_i32, %c0_i32_0 : i32, i32
  }
  func.func @transform_3(%arg0: i32) -> (i32, i32) {
    %c0_i32 = arith.constant 0 : i32
    %c0_i32_0 = arith.constant 0 : i32
    %c0_i32_1 = arith.constant 0 : i32
    return %c0_i32, %c0_i32_0 : i32, i32
  }
  func.func @transform_4(%arg0: i32) -> (i32, i32) {
    %c0_i32 = arith.constant 0 : i32
    %c0_i32_0 = arith.constant 0 : i32
    %c0_i32_1 = arith.constant 0 : i32
    return %c0_i32, %c0_i32_0 : i32, i32
  }
  func.func @transform_5(%arg0: i32) -> (i32, i32) {
    %c0_i32 = arith.constant 0 : i32
    %c0_i32_0 = arith.constant 0 : i32
    %c0_i32_1 = arith.constant 0 : i32
    return %c0_i32, %c0_i32_0 : i32, i32
  }
  func.func @transform_6(%arg0: i32) -> (i32, i32) {
    %c0_i32 = arith.constant 0 : i32
    %c0_i32_0 = arith.constant 0 : i32
    return %arg0, %c0_i32 : i32, i32
  }
}

</mosaic_0001>

<bundles_post_ra>
// kernel: tpu_custom_call.1
= control target key start
LH: loop header
LB: loop body
LE: loop exit
PB: predicated region body
PF: predicated region fallthrough
CT: control target
= control target key end

     0   :  { %11 = vsyncpa [#allocation3], 0  ;;  %s1059_s0 = inlined_call_operand.vmem [shape: f32[8,1], index: 0, kind: input, shape index: {}]   ;;  %s1060_s1 = inlined_call_operand.vmem [shape: f32[1,128], index: 1, kind: input, shape index: {}]   ;;  %s1061_s2 = inlined_call_operand.hbm [shape: f32[256,128], index: 2, kind: input, shape index: {}]   ;;  %s1062_s3 = inlined_call_operand.vmem [shape: f32[1,128], index: 3, kind: input, shape index: {}]   ;;  %s1063_s4 = inlined_call_operand.hbm [shape: f32[128,128], index: 4, kind: input, shape index: {}]   ;;  %s1064_s5 = inlined_call_operand.vmem [shape: f32[1,128], index: 5, kind: input, shape index: {}]   ;;  %s1065_s6 = inlined_call_operand.hbm [shape: f32[8,128], index: 6, kind: output, shape index: {}]  }
   0x1   :  { %12 = vsyncpa [#allocation6], 0 }
   0x2   :  { %13 = vsyncpa [#allocation4], 0  ;;  %s910_s21 = smov [#allocation2]   ;;  %s838_s25 = scalar_lea.hbm %s1061_s2, 4096 }
   0x3   :  { %s23_s22 = sshll.u32 %s910_s21, 4  ;;  %p839_p0 = scmp.ne.s32.totalorder %s1061_s2, %s838_s25  ;;  %s24_s22 = int_to_ptr.vmem [resolvable:$true] %s23_s22 }
   0x4   :  { %p842_p1 = scmp.lt.u32.totalorder %s838_s25, %s1061_s2 }
   0x6   :  { %p844_p2 = pnand %p842_p1, %p839_p0 }
   0x8   :  { %847 = shalt.err (!%p844_p2)
}
   0x9   :  { %s848_s30 = scalar_lea.vmem %s24_s22, 4096  ;;  %p853_p4 = scmp.lt.s32.totalorder %s24_s22, %s24_s22 }
   0xa   :  { %p849_p3 = scmp.ne.s32.totalorder %s24_s22, %s848_s30  ;;  %p854_p5 = scmp.lt.s32.totalorder %s848_s30, %s848_s30 }
   0xc   :  { %p855_p6 = por %p854_p5, %p853_p4 }
   0xe   :  { %p856_p7 = pnand %p855_p6, %p849_p3 }
  0x10   :  { %859 = shalt.err (!%p856_p7)
}
  0x11   :  { %s911_s7 = smov 128   ;;  %s912_s8 = smov 8  }
  0x12   :  { %29 = dma.hbm_to_vmem [thread:$0]  %s1061_s2, 4096, %s24_s22, [#allocation3], %s911_s7, %s911_s7, %s912_s8  }
  0x13   :  { %s913_s11 = smov [#allocation5]   ;;  %s860_s15 = scalar_lea.hbm %s1063_s4, 2048 }
  0x14   :  { %s37_s12 = sshll.u32 %s913_s11, 4  ;;  %p861_p8 = scmp.ne.s32.totalorder %s1063_s4, %s860_s15  ;;  %s38_s12 = int_to_ptr.vmem [resolvable:$true] %s37_s12 }
  0x15   :  { %p864_p9 = scmp.lt.u32.totalorder %s860_s15, %s1063_s4 }
  0x17   :  { %p866_p10 = pnand %p864_p9, %p861_p8 }
  0x19   :  { %869 = shalt.err (!%p866_p10)
}
  0x1a   :  { %s870_s20 = scalar_lea.vmem %s38_s12, 2048  ;;  %p875_p12 = scmp.lt.s32.totalorder %s38_s12, %s38_s12 }
  0x1b   :  { %p871_p11 = scmp.ne.s32.totalorder %s38_s12, %s870_s20  ;;  %p876_p13 = scmp.lt.s32.totalorder %s870_s20, %s870_s20 }
  0x1d   :  { %p877_p0 = por %p876_p13, %p875_p12 }
  0x1f   :  { %p878_p1 = pnand %p877_p0, %p871_p11 }
  0x21   :  { %881 = shalt.err (!%p878_p1)
}
  0x22   :  { %43 = dma.hbm_to_vmem [thread:$0]  %s1063_s4, 2048, %s38_s12, [#allocation6], %s911_s7, %s911_s7, %s912_s8  }
  0x23   :  { %904 = dma.done.wait [#allocation3], 4096  }
  0x24   :  { %905 = vsyncadd [#allocation3], 4294963200 }
  0x25   :  { %906 = dma.done.wait [#allocation6], 2048  }
  0x26   :  { %907 = vsyncadd [#allocation6], 4294965248  ;;  %v914_v0 = vmov 0   ;;  %v52_v1 = vld [vmem:[%s1059_s0] sm:$0xff]  ;;  %v290_v3 = vld [vmem:[#allocation2 + $0x88] sm:$0xff]  ;;  %v915_v7 = vmov 0.0|0.0  }
  0x27   :  { %829 = vset.pattern.permute.xlu0 %v914_v0  ;;  %v289_v2 = vld [vmem:[#allocation2 + $0x80] sm:$0xff]  ;;  %v274_v6 = vld [vmem:[#allocation2 + $0x8] sm:$0xff]  ;;  %738 = vmatprep.subr.bf16.mxu0 %v915_v7  ;;  %v291_v9 = vld [vmem:[#allocation2 + $0x90] sm:$0xff]  ;;  %vm916_vm0 = vmmov 0   ;;  %v917_v32 = vmov 0.0   ;;  %s924_s27 = smov [#allocation7]  }
  0x28   :  { %56 = vperm.xlu0 %829, %v52_v1   ;;  %v273_v4 = vld [vmem:[#allocation2] sm:$0xff]  ;;  %v739_v5 = vpack.c.bf16 %v290_v3, %v289_v2  ;;  %762 = vmatprep.subr.bf16.mxu1 %v915_v7  ;;  %v292_v10 = vld [vmem:[#allocation2 + $0x98] sm:$0xff]  ;;  %v275_v11 = vld [vmem:[#allocation2 + $0x10] sm:$0xff]  ;;  %v918_v1 = vmov 683565275   ;;  %s560_s28 = sshll.u32 %s924_s27, 4  ;;  %s561_s28 = int_to_ptr.vmem [resolvable:$true] %s560_s28 }
  0x29   :  { %v763_v8 = vpack.c.bf16 %v274_v6, %v273_v4  ;;  %v742_v12 = vpack.c.bf16 %v292_v10, %v291_v9  ;;  %v276_v13 = vld [vmem:[#allocation2 + $0x18] sm:$0xff]  ;;  %v293_v15 = vld [vmem:[#allocation2 + $0xa0] sm:$0xff]  ;;  %v294_v16 = vld [vmem:[#allocation2 + $0xa8] sm:$0xff]  ;;  %665 = vmatprep.mubr.msk.f32.mxu0 %vm916_vm0, %v917_v32  ;;  %700 = vmatprep.mubr.msk.f32.mxu1 %vm916_vm0, %v917_v32  ;;  %v919_v3 = vmov 2475754826   ;;  %p887_p3 = scmp.lt.s32.totalorder %s561_s28, %s561_s28 }
  0x2a   :  { %740 = vmatpush3.bf16.msra.mxu0 %v739_v5  ;;  %v766_v14 = vpack.c.bf16 %v276_v13, %v275_v11  ;;  %v277_v17 = vld [vmem:[#allocation2 + $0x20] sm:$0xff]  ;;  %v745_v18 = vpack.c.bf16 %v294_v16, %v293_v15  ;;  %v278_v19 = vld [vmem:[#allocation2 + $0x28] sm:$0xff]  ;;  %v295_v21 = vld [vmem:[#allocation2 + $0xb0] sm:$0xff]  ;;  %v920_v6 = vmov 2131351028  }
  0x2b   :  { %764 = vmatpush3.bf16.msra.mxu1 %v763_v8  ;;  %741 = vmatprep.subr.bf16.mxu0 %v915_v7  ;;  %v769_v20 = vpack.c.bf16 %v278_v19, %v277_v17  ;;  %v296_v22 = vld [vmem:[#allocation2 + $0xb8] sm:$0xff]  ;;  %v279_v23 = vld [vmem:[#allocation2 + $0x30] sm:$0xff]  ;;  %v297_v27 = vld [vmem:[#allocation2 + $0xc0] sm:$0xff]  ;;  %v921_v10 = vmov 2102212464  }
  0x2c   :  { %765 = vmatprep.subr.bf16.mxu1 %v915_v7  ;;  %v748_v24 = vpack.c.bf16 %v296_v22, %v295_v21  ;;  %v280_v25 = vld [vmem:[#allocation2 + $0x38] sm:$0xff]  ;;  %v298_v28 = vld [vmem:[#allocation2 + $0xc8] sm:$0xff]  ;;  %v281_v29 = vld [vmem:[#allocation2 + $0x40] sm:$0xff]  ;;  %v922_v13 = vmov 920167782  }
  0x2d   :  { %v772_v26 = vpack.c.bf16 %v280_v25, %v279_v23  ;;  %v751_v30 = vpack.c.bf16 %v298_v28, %v297_v27  ;;  %v282_v31 = vld [vmem:[#allocation2 + $0x48] sm:$0xff]  ;;  %v299_v34 = vld [vmem:[#allocation2 + $0xd0] sm:$0xff]  ;;  %v300_v35 = vld [vmem:[#allocation2 + $0xd8] sm:$0xff]  ;;  %v923_v16 = vmov 1326507024  }
  0x2e   :  { %743 = vmatpush3.bf16.msra.mxu0 %v742_v12  ;;  %v775_v33 = vpack.c.bf16 %v282_v31, %v281_v29  ;;  %v283_v36 = vld [vmem:[#allocation2 + $0x50] sm:$0xff]  ;;  %v284_v37 = vld [vmem:[#allocation2 + $0x58] sm:$0xff]  ;;  %v754_v38 = vpack.c.bf16 %v300_v35, %v299_v34  ;;  %v301_v40 = vld [vmem:[#allocation2 + $0xe0] sm:$0xff] }
  0x2f   :  { %767 = vmatpush3.bf16.msra.mxu1 %v766_v14  ;;  %744 = vmatprep.subr.bf16.mxu0 %v915_v7  ;;  %v778_v39 = vpack.c.bf16 %v284_v37, %v283_v36  ;;  %v302_v41 = vld [vmem:[#allocation2 + $0xe8] sm:$0xff]  ;;  %v285_v42 = vld [vmem:[#allocation2 + $0x60] sm:$0xff]  ;;  %v303_v46 = vld [vmem:[#allocation2 + $0xf0] sm:$0xff] }
  0x30   :  { %768 = vmatprep.subr.bf16.mxu1 %v915_v7  ;;  %v286_v43 = vld [vmem:[#allocation2 + $0x68] sm:$0xff]  ;;  %v757_v44 = vpack.c.bf16 %v302_v41, %v301_v40  ;;  %v304_v47 = vld [vmem:[#allocation2 + $0xf8] sm:$0xff]  ;;  %v287_v48 = vld [vmem:[#allocation2 + $0x70] sm:$0xff] }
  0x31   :  { %v781_v45 = vpack.c.bf16 %v286_v43, %v285_v42  ;;  %v288_v49 = vld [vmem:[#allocation2 + $0x78] sm:$0xff]  ;;  %v760_v50 = vpack.c.bf16 %v304_v47, %v303_v46  ;;  %v570_v52 = vld [vmem:[%s1060_s1] ss:$0 sm:$0xff] }
  0x32   :  { %746 = vmatpush3.bf16.msra.mxu0 %v745_v18  ;;  %v784_v51 = vpack.c.bf16 %v288_v49, %v287_v48 }
  0x33   :  { %770 = vmatpush3.bf16.msra.mxu1 %v769_v20  ;;  %747 = vmatprep.subr.bf16.mxu0 %v915_v7 }
  0x34   :  { %771 = vmatprep.subr.bf16.mxu1 %v915_v7 }
  0x36   :  { %749 = vmatpush3.bf16.msra.mxu0 %v748_v24 }
  0x37   :  { %773 = vmatpush3.bf16.msra.mxu1 %v772_v26  ;;  %750 = vmatprep.subr.bf16.mxu0 %v915_v7 }
  0x38   :  { %774 = vmatprep.subr.bf16.mxu1 %v915_v7 }
  0x3a   :  { %752 = vmatpush3.bf16.msra.mxu0 %v751_v30 }
  0x3b   :  { %776 = vmatpush3.bf16.msra.mxu1 %v775_v33  ;;  %753 = vmatprep.subr.bf16.mxu0 %v915_v7 }
  0x3c   :  { %777 = vmatprep.subr.bf16.mxu1 %v915_v7 }
  0x3e   :  { %755 = vmatpush3.bf16.msra.mxu0 %v754_v38 }
  0x3f   :  { %779 = vmatpush3.bf16.msra.mxu1 %v778_v39  ;;  %756 = vmatprep.subr.bf16.mxu0 %v915_v7 }
  0x40   :  { %780 = vmatprep.subr.bf16.mxu1 %v915_v7 }
  0x42   :  { %758 = vmatpush3.bf16.msra.mxu0 %v757_v44 }
  0x43   :  { %782 = vmatpush3.bf16.msra.mxu1 %v781_v45  ;;  %759 = vmatprep.subr.bf16.mxu0 %v915_v7 }
  0x44   :  { %783 = vmatprep.subr.bf16.mxu1 %v915_v7 }
  0x46   :  { %761 = vmatpush3.bf16.msra.mxu0 %v760_v50 }
  0x47   :  { %785 = vmatpush3.bf16.msra.mxu1 %v784_v51  ;;  %786 = vmatprep.subr.bf16.mxu0 %v915_v7 }
  0xa7   :  { %v57_v53 = vpop.permute.xlu0 %56 }
  0xa8   :  { %v1011_v54 = vmul.f32 %v570_v52, %v57_v53 }
  0xaa   :  { %v69_v55 = vand.u32 2139095040, %v1011_v54  ;;  %v66_v59 = vand.u32 2147483647, %v1011_v54  ;;  %vm68_vm8 = vcmp.lt.s32.totalorder %v1011_v54, 0 }
  0xac   :  { %v70_v56 = vshrl.u32 %v69_v55, 23  ;;  %v73_v62 = vand.u32 8388607, %v66_v59  ;;  %vm67_vm9 = vcmp.le.f32.partialorder %v66_v59, 0.7853982 }
  0xae   :  { %v571_v57 = vadd.s32 4294967169, %v70_v56  ;;  %v74_v18 = vor.u32 8388608, %v73_v62 }
  0xb0   :  { %v76_v58 = vadd.s32 1, %v571_v57  ;;  %v114_v33 = vshll.u32 %v74_v18, 8 }
  0xb2   :  { %vm77_vm1 = vcmp.gt.s32.totalorder %v76_v58, 0 }
  0xb3   :  { %v78_v60 = vsel %vm77_vm1, %v76_v58, 0  ;;  %vm158_vm1 = vweird.f32 %v1011_v54 }
  0xb4   :  { %v80_v61 = vand.u32 31, %v78_v60  ;;  %v79_v0 = vshrl.u32 %v78_v60, 5 }
  0xb6   :  { %v81_v63 = vsub.s32 32, %v80_v61  ;;  %v83_v2 = vshll.u32 %v918_v1, %v80_v61  ;;  %v86_v4 = vshll.u32 %v919_v3, %v80_v61  ;;  %v89_v9 = vshll.u32 %v920_v6, %v80_v61 }
  0xb7   :  { %v92_v12 = vshll.u32 %v921_v10, %v80_v61  ;;  %v95_v15 = vshll.u32 %v922_v13, %v80_v61  ;;  %vm98_vm2 = vcmp.lt.s32.totalorder %v79_v0, 1  ;;  %vm101_vm3 = vcmp.lt.s32.totalorder %v79_v0, 4 }
  0xb8   :  { %v84_v5 = vshrl.u32 %v919_v3, %v81_v63  ;;  %v87_v8 = vshrl.u32 %v920_v6, %v81_v63  ;;  %v90_v11 = vshrl.u32 %v921_v10, %v81_v63  ;;  %v93_v14 = vshrl.u32 %v922_v13, %v81_v63 }
  0xb9   :  { %v96_v17 = vshrl.u32 %v923_v16, %v81_v63  ;;  %v82_v27 = vshrl.u32 %v918_v1, %v81_v63  ;;  %vm100_vm4 = vcmp.lt.s32.totalorder %v79_v0, 3  ;;  %vm99_vm5 = vcmp.lt.s32.totalorder %v79_v0, 2 }
  0xba   :  { %v85_v19 = vor.u32 %v84_v5, %v83_v2  ;;  %v88_v20 = vor.u32 %v87_v8, %v86_v4  ;;  %v91_v21 = vor.u32 %v90_v11, %v89_v9  ;;  %v94_v22 = vor.u32 %v93_v14, %v92_v12 }
  0xbb   :  { %v97_v23 = vor.u32 %v96_v17, %v95_v15 }
  0xbc   :  { %v103_v24 = vsel %vm101_vm3, %v91_v21, 2102212464  ;;  %v106_v25 = vsel %vm98_vm2, %v85_v19, %v88_v20  ;;  %v110_v26 = vsel %vm98_vm2, %v88_v20, %v91_v21  ;;  %v107_v28 = vsel %vm101_vm3, %v94_v22, 920167782 }
  0xbd   :  { %v111_v29 = vsel %vm101_vm3, %v97_v23, 1326507024  ;;  %v108_v30 = vsel %vm100_vm4, %v91_v21, %v107_v28  ;;  %v102_v34 = vsel %vm98_vm2, %v82_v27, %v85_v19  ;;  %v104_v35 = vsel %vm100_vm4, %v88_v20, %v103_v24  ;;  %v460_v27 = vld [vmem:[#allocation5] sm:$0xff]  ;;  %v461_v28 = vld [vmem:[#allocation5 + $0x8] sm:$0xff] }
  0xbe   :  { %v112_v31 = vsel %vm100_vm4, %v94_v22, %v111_v29  ;;  %v109_v36 = vsel %vm99_vm5, %v106_v25, %v108_v30  ;;  %v105_v42 = vsel %vm99_vm5, %v102_v34, %v104_v35  ;;  %v787_v29 = vpack.c.bf16 %v461_v28, %v460_v27  ;;  %v462_v30 = vld [vmem:[#allocation5 + $0x10] sm:$0xff]  ;;  %v465_v34 = vld [vmem:[#allocation5 + $0x28] sm:$0xff] }
  0xbf   :  { %v113_v37 = vsel %vm99_vm5, %v110_v26, %v112_v31  ;;  %v1020_v40 = vmul.u32.u64.low %v114_v33, %v109_v36  ;;  %v1021_v41 = vmul.u32.u64.high %v114_v33, %v109_v36, %v1020_v40  ;;  %v121_v44 = vmul.u32 %v114_v33, %v105_v42  ;;  %v463_v31 = vld [vmem:[#allocation5 + $0x18] sm:$0xff]  ;;  %v466_v36 = vld [vmem:[#allocation5 + $0x30] sm:$0xff] }
  0xc0   :  { %v1017_v38 = vmul.u32.u64.low %v114_v33, %v113_v37  ;;  %v1018_v39 = vmul.u32.u64.high %v114_v33, %v113_v37, %v1017_v38  ;;  %v790_v33 = vpack.c.bf16 %v463_v31, %v462_v30  ;;  %v471_v42 = vld [vmem:[#allocation5 + $0x58] sm:$0xff] }
  0xc1   :  { %v124_v43 = vadd.s32 1, %v1021_v41  ;;  %v468_v38 = vld [vmem:[#allocation5 + $0x40] sm:$0xff] }
  0xc2   :  { %vm123_vm6 = vc.u32 %v1018_v39, %v1020_v40  ;;  %v122_v57 = vadd.s32 %v1020_v40, %v1018_v39  ;;  %v469_v39 = vld [vmem:[#allocation5 + $0x48] sm:$0xff] }
  0xc3   :  { %v125_v45 = vsel %vm123_vm6, %v124_v43, %v1021_v41  ;;  %v799_v40 = vpack.c.bf16 %v469_v39, %v468_v38  ;;  %v470_v41 = vld [vmem:[#allocation5 + $0x50] sm:$0xff] }
  0xc4   :  { %v126_v46 = vadd.s32 %v125_v45, %v121_v44  ;;  %v802_v43 = vpack.c.bf16 %v471_v42, %v470_v41  ;;  %v472_v44 = vld [vmem:[#allocation5 + $0x60] sm:$0xff]  ;;  %v473_v45 = vld [vmem:[#allocation5 + $0x68] sm:$0xff] }
  0xc6   :  { %v127_v47 = vadd.s32 536870912, %v126_v46 }
  0xc8   :  { %v128_v48 = vshrl.u32 %v127_v47, 30  ;;  %v474_v47 = vld [vmem:[#allocation5 + $0x70] sm:$0xff] }
  0xca   :  { %v129_v49 = vshll.u32 %v128_v48, 30  ;;  %v152_v6 = vsub.s32 4, %v128_v48 }
  0xcc   :  { %v130_v50 = vsub.s32 %v126_v46, %v129_v49  ;;  %v153_v10 = vsel %vm68_vm8, %v152_v6, %v128_v48  ;;  %v805_v46 = vpack.c.bf16 %v473_v45, %v472_v44  ;;  %v475_v48 = vld [vmem:[#allocation5 + $0x78] sm:$0xff] }
  0xcd   :  { %v155_v12 = vsel %vm67_vm9, 0, %v153_v10  ;;  %v808_v49 = vpack.c.bf16 %v475_v48, %v474_v47 }
  0xce   :  { %v132_v51 = vsub.s32 0, %v130_v50  ;;  %v262_v13 = vadd.s32 3, %v155_v12  ;;  %v159_v15 = vand.u32 3, %v155_v12 }
  0xd0   :  { %v572_v52 = vmin.u32 %v132_v51, %v130_v50  ;;  %v263_v14 = vand.u32 3, %v262_v13  ;;  %vm164_vm11 = vcmp.eq.s32.totalorder %v159_v15, 2  ;;  %vm161_vm13 = vcmp.eq.s32.totalorder %v159_v15, 0 }
  0xd1   :  { %vm160_vm15 = vcmp.lt.s32.totalorder %v159_v15, 2 }
  0xd2   :  { %v134_v53 = vclz %v572_v52  ;;  %vm268_vm10 = vcmp.eq.s32.totalorder %v263_v14, 2  ;;  %vm265_vm12 = vcmp.eq.s32.totalorder %v263_v14, 0  ;;  %vm264_vm14 = vcmp.lt.s32.totalorder %v263_v14, 2  ;;  %v579_v52 = vld [vmem:[%s1062_s3] ss:$0 sm:$0xff]  ;;  %s882_s3 = scalar_lea.vmem %s561_s28, 128 }
  0xd3   :  { %p883_p2 = scmp.ne.s32.totalorder %s561_s28, %s882_s3  ;;  %p888_p4 = scmp.lt.s32.totalorder %s882_s3, %s882_s3 }
  0xd4   :  { %v573_v55 = vadd.s32 4294967294, %v134_v53 }
  0xd5   :  { %p889_p5 = por %p888_p4, %p887_p3 }
  0xd6   :  { %vm574_vm7 = vcmp.lt.s32.totalorder %v573_v55, 0 }
  0xd7   :  { %v137_v56 = vsel %vm574_vm7, 0, %v573_v55  ;;  %p890_p6 = pnand %p889_p5, %p883_p2 }
  0xd8   :  { %v138_v58 = vsub.s32 32, %v137_v56  ;;  %v142_v60 = vsub.s32 4294967266, %v137_v56  ;;  %v139_v61 = vshll.u32 %v130_v50, %v137_v56 }
  0xda   :  { %v140_v62 = vshrl.u32 %v122_v57, %v138_v58  ;;  %v143_v63 = vadd.s32 127, %v142_v60 }
  0xdc   :  { %v141_v0 = vor.u32 %v140_v62, %v139_v61  ;;  %v144_v1 = vshll.u32 %v143_v63, 23  ;;  %v581_v63 = vld [vmem:[%s1064_s5] ss:$0 sm:$0xff] }
  0xde   :  { %v145_v2 = vor.u32 4788187, %v144_v1  ;;  %v148_v4 = vcvt.s32.f32 %v141_v0 }
  0xe0   :  { %v146_v3 = vand.u32 2147483647, %v145_v2 }
  0xe2   :  { %v149_v5 = vmul.f32 %v148_v4, %v146_v3 }
  0xe4   :  { %v150_v8 = vxor.u32 2147483648, %v149_v5 }
  0xe6   :  { %v151_v9 = vsel %vm68_vm8, %v150_v8, %v149_v5 }
  0xe7   :  { %v154_v11 = vsel %vm67_vm9, %v1011_v54, %v151_v9  ;;  %v464_v54 = vld [vmem:[#allocation5 + $0x20] sm:$0xff] }
  0xe8   :  { %830 = vcosq.f32 %v154_v11  ;;  %v793_v35 = vpack.c.bf16 %v465_v34, %v464_v54 }
  0xe9   :  { %832 = vsinq.f32 %v154_v11 }
  0xf2   :  { %v831_v16 = vpop.eup %830 }
  0xf3   :  { %v833_v17 = vpop.eup %832  ;;  %v165_v18 = vxor.u32 2147483648, %v831_v16 }
  0xf4   :  { %v162_v19 = vxor.u32 2147483648, %v833_v17 }
  0xf5   :  { %v270_v20 = vsel %vm268_vm10, %v165_v18, %v833_v17  ;;  %v166_v21 = vsel %vm164_vm11, %v165_v18, %v833_v17 }
  0xf6   :  { %v267_v59 = vsel %vm265_vm12, %v831_v16, %v162_v19  ;;  %v163_v22 = vsel %vm161_vm13, %v831_v16, %v162_v19 }
  0xf7   :  { %v271_v23 = vsel %vm264_vm14, %v267_v59, %v270_v20  ;;  %v167_v24 = vsel %vm160_vm15, %v163_v22, %v166_v21 }
  0xf8   :  { %v272_v25 = vsel %vm158_vm1, nan, %v271_v23  ;;  %v168_v26 = vsel %vm158_vm1, nan, %v167_v24 }
  0xf9   :  { %666 = vmatmul.mubr.f32.vlgmr.msra.gmra.mrb[0].mxu0 %v272_v25  ;;  %701 = vmatmul.mubr.f32.vlgmr.msra.gmra.mrb[0].mxu1 %v168_v26 }
  0xfa   :  { %735 = vmatprep.mubr.msk.f32.mxu0 %vm916_vm0, %v917_v32  ;;  %788 = vmatpush3.bf16.msra.mxu0 %v787_v29  ;;  %v467_v32 = vld [vmem:[#allocation5 + $0x38] sm:$0xff] }
  0xfb   :  { %789 = vmatprep.subr.bf16.mxu0 %v915_v7  ;;  %v796_v37 = vpack.c.bf16 %v467_v32, %v466_v36 }
  0xfe   :  { %791 = vmatpush3.bf16.msra.mxu0 %v790_v33 }
  0xff   :  { %792 = vmatprep.subr.bf16.mxu0 %v915_v7 }
 0x102   :  { %794 = vmatpush3.bf16.msra.mxu0 %v793_v35 }
 0x103   :  { %795 = vmatprep.subr.bf16.mxu0 %v915_v7 }
 0x106   :  { %797 = vmatpush3.bf16.msra.mxu0 %v796_v37 }
 0x107   :  { %798 = vmatprep.subr.bf16.mxu0 %v915_v7 }
 0x10a   :  { %800 = vmatpush3.bf16.msra.mxu0 %v799_v40 }
 0x10b   :  { %801 = vmatprep.subr.bf16.mxu0 %v915_v7 }
 0x10e   :  { %803 = vmatpush3.bf16.msra.mxu0 %v802_v43 }
 0x10f   :  { %804 = vmatprep.subr.bf16.mxu0 %v915_v7 }
 0x112   :  { %806 = vmatpush3.bf16.msra.mxu0 %v805_v46 }
 0x113   :  { %807 = vmatprep.subr.bf16.mxu0 %v915_v7 }
 0x116   :  { %809 = vmatpush3.bf16.msra.mxu0 %v808_v49 }
 0x1cc   :  { %v371_v50 = vpop.f32.mrb[0].mxu0  ;;  %v441_v51 = vpop.f32.mrb[0].mxu1 }
 0x1cd   :  { %v442_v53 = vadd.f32 %v441_v51, %v371_v50  ;;  %v667_v55 = vpop.f32.mrb[1].mxu0  ;;  %v702_v56 = vpop.f32.mrb[1].mxu1 }
 0x1cf   :  { %v452_v57 = vadd.f32 %v579_v52, %v442_v53 }
 0x1d1   :  { %v580_v58 = vmul.f32 -1.442695, %v452_v57 }
 0x1d3   :  { %834 = vpow2.f32 %v580_v58 }
 0x1dd   :  { %v835_v60 = vpop.eup %834 }
 0x1de   :  { %v456_v61 = vadd.f32 1.0, %v835_v60 }
 0x1e0   :  { %836 = vrcp.f32 %v456_v61 }
 0x1ea   :  { %v837_v7 = vpop.eup %836 }
 0x1eb   :  { %v459_v62 = vmul.f32 %v837_v7, %v452_v57 }
 0x1ed   :  { %736 = vmatmul.mubr.f32.vlgmr.msra.gmra.mrb[2].mxu0 %v459_v62 }
 0x2c0   :  { %v549_v0 = vpop.f32.mrb[2].mxu0 }
 0x2c1   :  { %v550_v1 = vadd.f32 %v581_v63, %v549_v0  ;;  %v737_v2 = vpop.f32.mrb[3].mxu0 }
 0x2c3   :  { %553 = vst [vmem:[#allocation7] sm:$0xff] %v550_v1 }
 0x2c4   :  { %893 = shalt.err (!%p890_p6)
}
 0x2c5   :  { %s894_s7 = scalar_lea.hbm %s1065_s6, 128 }
 0x2c6   :  { %p895_p7 = scmp.ne.s32.totalorder %s1065_s6, %s894_s7  ;;  %p898_p8 = scmp.lt.u32.totalorder %s894_s7, %s1065_s6 }
 0x2c8   :  { %p900_p9 = pnand %p898_p8, %p895_p7 }
 0x2ca   :  { %903 = shalt.err (!%p900_p9)
}
 0x2cb   :  { %563 = dma.vmem_to_hbm [thread:$0]  %s561_s28, 128, %s1065_s6, [#allocation4]  }
 0x2cc   :  { %908 = dma.done.wait [#allocation4], 128  }
 0x2cd   :  { %909 = vsyncadd [#allocation4], 4294967168 }
 0x2ce   :  { %567 = vsyncpa [#allocation3], 1 }
 0x2cf   :  { %568 = vsyncpa [#allocation6], 1 }
 0x2d0   :  { %569 = vsyncpa [#allocation4], 1 }

</bundles_post_ra>
